<compile_context>
chip_gen: v5e
topology: v5e:2x2
jax: 0.10.0
libtpu: 0.0.40
codegen_flags: <defaults>
</compile_context>

<pallas_src>
import jax
import jax.numpy as jnp
from jax.experimental import pallas as pl
from jax.experimental.pallas import tpu as pltpu

N_INPUTS = 16
N_HIDDEN = 16
N_OUTPUTS = 4


def _round_up(x, m):
    return ((x + m - 1) // m) * m


def _policy_kernel(x_ref, w1t_ref, b1_ref, w2t_ref, b2_ref, out_ref):
    x = x_ref[...]          # (TB, 16)   batch-major input tile
    w1t = w1t_ref[...]      # (16, 16)   [out, in]
    b1 = b1_ref[...]        # (16, 1)
    w2t = w2t_ref[...]      # (4, 16)    [out, in]
    b2 = b2_ref[...]        # (4, 1)

    # h[o, b] = sum_i w1t[o, i] * x[b, i]  -> (16, TB) feature-major, straight
    # off the MXU (no explicit transpose of x anywhere).
    h = jax.lax.dot_general(
        w1t, x, (((1,), (1,)), ((), ())),
        preferred_element_type=jnp.float32) + b1
    h = jnp.maximum(h, 0.0)                                          # ReLU

    logits = jnp.dot(w2t, h, preferred_element_type=jnp.float32) + b2  # (4, TB)

    # Numerically-stable softmax over the 4 classes (sublane axis), per column.
    m = jnp.max(logits, axis=0, keepdims=True)
    e = jnp.exp(logits - m)
    s = jnp.sum(e, axis=0, keepdims=True)
    out_ref[...] = e / s


def policy_estimator_forward(state, w1, b1, w2, b2, *, tb_max=16384):
    """Forward pass. state: (B, 16) -> (B, 4) action probabilities (float32)."""
    x = jnp.asarray(state, jnp.float32)           # torch.FloatTensor(state)
    B = x.shape[0]

    # Batch tile: multiple of 128, capped by tb_max (clamped defensively),
    # and sized so the grid keeps >= 2 steps when B allows (v7x megacore).
    tb_cap = max(128, (int(tb_max) // 128) * 128)
    half = -(-B // 2)                              # cdiv(B, 2)
    TB = max(128, min(tb_cap, _round_up(half, 128)))
    grid = (pl.cdiv(B, TB),)

    # Small resident parameter operands ([out, in] weights, column biases).
    w1t = jnp.asarray(w1, jnp.float32).T                       # (16, 16)
    b1c = jnp.asarray(b1, jnp.float32).reshape(N_HIDDEN, 1)    # (16, 1)
    w2t = jnp.asarray(w2, jnp.float32).T                       # (4, 16)
    b2c = jnp.asarray(b2, jnp.float32).reshape(N_OUTPUTS, 1)   # (4, 1)

    out_t = pl.pallas_call(
        _policy_kernel,
        out_shape=jax.ShapeDtypeStruct((N_OUTPUTS, B), jnp.float32),
        grid=grid,
        in_specs=[
            pl.BlockSpec((TB, N_INPUTS), lambda i: (i, 0)),
            pl.BlockSpec((N_HIDDEN, N_INPUTS), lambda i: (0, 0)),
            pl.BlockSpec((N_HIDDEN, 1), lambda i: (0, 0)),
            pl.BlockSpec((N_OUTPUTS, N_HIDDEN), lambda i: (0, 0)),
            pl.BlockSpec((N_OUTPUTS, 1), lambda i: (0, 0)),
        ],
        out_specs=pl.BlockSpec((N_OUTPUTS, TB), lambda i: (0, i)),
        compiler_params=pltpu.CompilerParams(
            dimension_semantics=("parallel",)),
    )(x, w1t, b1c, w2t, b2c)

    return out_t.T                                 # (B, 4)


def init_params(key):
    """Deterministic init mimicking PyTorch's default Linear init
    (uniform in +-1/sqrt(fan_in)); weights stored as [in, out]."""
    k1, k2, k3, k4 = jax.random.split(key, 4)
    bound1 = 1.0 / jnp.sqrt(jnp.float32(N_INPUTS))
    bound2 = 1.0 / jnp.sqrt(jnp.float32(N_HIDDEN))
    w1 = jax.random.uniform(k1, (N_INPUTS, N_HIDDEN), jnp.float32, -bound1, bound1)
    b1 = jax.random.uniform(k2, (N_HIDDEN,), jnp.float32, -bound1, bound1)
    w2 = jax.random.uniform(k3, (N_HIDDEN, N_OUTPUTS), jnp.float32, -bound2, bound2)
    b2 = jax.random.uniform(k4, (N_OUTPUTS,), jnp.float32, -bound2, bound2)
    return w1, b1, w2, b2


def _reference(state, w1, b1, w2, b2):
    h = jnp.maximum(state @ w1 + b1, 0.0)
    return jax.nn.softmax(h @ w2 + b2, axis=-1)


if __name__ == "__main__":
    key = jax.random.PRNGKey(0)
    pkey, xkey, xkey2 = jax.random.split(key, 3)

    w1, b1, w2, b2 = init_params(pkey)

    # Small demo batch (single tile, batch < TB, exercises tail masking).
    batch = 2
    state = jax.random.normal(xkey, (batch, N_INPUTS), jnp.float32)
    probs = jax.block_until_ready(policy_estimator_forward(state, w1, b1, w2, b2))

    probs_ref = _reference(state, w1, b1, w2, b2)
    assert probs.shape == (batch, N_OUTPUTS)
    assert jnp.allclose(jnp.sum(probs, axis=-1), 1.0, atol=1e-5)
    assert jnp.allclose(probs, probs_ref, atol=1e-5)

    # Multi-tile grid path + non-multiple batch tail + non-multiple-of-128
    # tb_max (defensive clamp), still small shapes.
    batch2 = 300
    state2 = jax.random.normal(xkey2, (batch2, N_INPUTS), jnp.float32)
    probs2 = jax.block_until_ready(
        policy_estimator_forward(state2, w1, b1, w2, b2, tb_max=200))
    probs2_ref = _reference(state2, w1, b1, w2, b2)
    assert probs2.shape == (batch2, N_OUTPUTS)
    assert jnp.allclose(probs2, probs2_ref, atol=1e-5)

    print("KERNEL_OK")
</pallas_src>

<mosaic_0001>
module attributes {stable_mosaic.version = 11 : i64} {
  func.func @_policy_kernel(%arg0: i32, %arg1: memref<128x16xf32, #tpu.memory_space<vmem>>, %arg2: memref<16x16xf32, #tpu.memory_space<vmem>>, %arg3: memref<16x1xf32, #tpu.memory_space<vmem>>, %arg4: memref<4x16xf32, #tpu.memory_space<vmem>>, %arg5: memref<4x1xf32, #tpu.memory_space<vmem>>, %arg6: memref<4x128xf32, #tpu.memory_space<vmem>>) attributes {dimension_semantics = [#tpu.dimension_semantics<parallel>], iteration_bounds = array<i64: 1>, scalar_prefetch = 0 : i64, scratch_operands = 0 : i64, tpu.core_type = #tpu.core_type<tc>, window_params = [{transform_indices = @transform_0, window_bounds = array<i64: 128, 16>}, {pipeline_mode = #tpu.pipeline_mode<synchronous>, transform_indices = @transform_1, window_bounds = array<i64: 16, 16>}, {pipeline_mode = #tpu.pipeline_mode<synchronous>, transform_indices = @transform_2, window_bounds = array<i64: 16, 1>}, {pipeline_mode = #tpu.pipeline_mode<synchronous>, transform_indices = @transform_3, window_bounds = array<i64: 4, 16>}, {pipeline_mode = #tpu.pipeline_mode<synchronous>, transform_indices = @transform_4, window_bounds = array<i64: 4, 1>}, {transform_indices = @transform_5, window_bounds = array<i64: 4, 128>}]} {
    %c0 = arith.constant 0 : index
    %c0_0 = arith.constant 0 : index
    %0 = vector.load %arg1[%c0, %c0_0] : memref<128x16xf32, #tpu.memory_space<vmem>>, vector<128x16xf32>
    %c0_1 = arith.constant 0 : index
    %c0_2 = arith.constant 0 : index
    %1 = vector.load %arg2[%c0_1, %c0_2] : memref<16x16xf32, #tpu.memory_space<vmem>>, vector<16x16xf32>
    %c0_3 = arith.constant 0 : index
    %c0_4 = arith.constant 0 : index
    %2 = vector.load %arg3[%c0_3, %c0_4] : memref<16x1xf32, #tpu.memory_space<vmem>>, vector<16x1xf32>
    %c0_5 = arith.constant 0 : index
    %c0_6 = arith.constant 0 : index
    %3 = vector.load %arg4[%c0_5, %c0_6] : memref<4x16xf32, #tpu.memory_space<vmem>>, vector<4x16xf32>
    %c0_7 = arith.constant 0 : index
    %c0_8 = arith.constant 0 : index
    %4 = vector.load %arg5[%c0_7, %c0_8] : memref<4x1xf32, #tpu.memory_space<vmem>>, vector<4x1xf32>
    %cst = arith.constant dense<0.000000e+00> : vector<16x128xf32>
    %5 = tpu.matmul %1, %0, %cst {dimension_numbers = #tpu.dot_dimension_numbers<[1], [1], [0], [0], [0, 0, 1, 0], [], []>} : vector<16x16xf32>, vector<128x16xf32>, vector<16x128xf32> -> vector<16x128xf32>
    %6 = vector.broadcast %2 : vector<16x1xf32> to vector<16x128xf32>
    %7 = arith.addf %5, %6 : vector<16x128xf32>
    %cst_9 = arith.constant 0.000000e+00 : f32
    %8 = vector.broadcast %cst_9 : f32 to vector<16x128xf32>
    %9 = arith.maximumf %7, %8 : vector<16x128xf32>
    %cst_10 = arith.constant dense<0.000000e+00> : vector<4x128xf32>
    %10 = tpu.matmul %3, %9, %cst_10 {dimension_numbers = #tpu.dot_dimension_numbers<[1], [0], [0], [1], [0, 0, 1, 1], [], []>} : vector<4x16xf32>, vector<16x128xf32>, vector<4x128xf32> -> vector<4x128xf32>
    %11 = vector.broadcast %4 : vector<4x1xf32> to vector<4x128xf32>
    %12 = arith.addf %10, %11 : vector<4x128xf32>
    %cst_11 = arith.constant dense<0xFF800000> : vector<128xf32>
    %13 = vector.multi_reduction <maximumf>, %12, %cst_11 [0] : vector<4x128xf32> to vector<128xf32>
    %14 = vector.shape_cast %13 : vector<128xf32> to vector<1x128xf32>
    %15 = vector.broadcast %14 : vector<1x128xf32> to vector<4x128xf32>
    %16 = arith.subf %12, %15 : vector<4x128xf32>
    %17 = math.exp %16 : vector<4x128xf32>
    %cst_12 = arith.constant dense<0.000000e+00> : vector<128xf32>
    %18 = vector.multi_reduction <add>, %17, %cst_12 [0] : vector<4x128xf32> to vector<128xf32>
    %19 = vector.shape_cast %18 : vector<128xf32> to vector<1x128xf32>
    %20 = vector.broadcast %19 : vector<1x128xf32> to vector<4x128xf32>
    %21 = arith.divf %17, %20 : vector<4x128xf32>
    %c0_13 = arith.constant 0 : index
    %c0_14 = arith.constant 0 : index
    %22 = vector.load %arg6[%c0_13, %c0_14] : memref<4x128xf32, #tpu.memory_space<vmem>>, vector<4x128xf32>
    tpu.vector_store %arg6[%c0_13, %c0_14], %21 {strides = array<i32>} : memref<4x128xf32, #tpu.memory_space<vmem>>, vector<4x128xf32>,
    return
  }
  func.func @transform_0(%arg0: i32) -> (i32, i32) {
    %c0_i32 = arith.constant 0 : i32
    %c0_i32_0 = arith.constant 0 : i32
    return %arg0, %c0_i32 : i32, i32
  }
  func.func @transform_1(%arg0: i32) -> (i32, i32) {
    %c0_i32 = arith.constant 0 : i32
    %c0_i32_0 = arith.constant 0 : i32
    %c0_i32_1 = arith.constant 0 : i32
    return %c0_i32, %c0_i32_0 : i32, i32
  }
  func.func @transform_2(%arg0: i32) -> (i32, i32) {
    %c0_i32 = arith.constant 0 : i32
    %c0_i32_0 = arith.constant 0 : i32
    %c0_i32_1 = arith.constant 0 : i32
    return %c0_i32, %c0_i32_0 : i32, i32
  }
  func.func @transform_3(%arg0: i32) -> (i32, i32) {
    %c0_i32 = arith.constant 0 : i32
    %c0_i32_0 = arith.constant 0 : i32
    %c0_i32_1 = arith.constant 0 : i32
    return %c0_i32, %c0_i32_0 : i32, i32
  }
  func.func @transform_4(%arg0: i32) -> (i32, i32) {
    %c0_i32 = arith.constant 0 : i32
    %c0_i32_0 = arith.constant 0 : i32
    %c0_i32_1 = arith.constant 0 : i32
    return %c0_i32, %c0_i32_0 : i32, i32
  }
  func.func @transform_5(%arg0: i32) -> (i32, i32) {
    %c0_i32 = arith.constant 0 : i32
    %c0_i32_0 = arith.constant 0 : i32
    return %c0_i32, %arg0 : i32, i32
  }
}

</mosaic_0001>

<bundles_post_ra>
// kernel: tpu_custom_call.1
= control target key start
LH: loop header
LB: loop body
LE: loop exit
PB: predicated region body
PF: predicated region fallthrough
CT: control target
= control target key end

     0   :  { %10 = vsyncpa [#allocation3], 0  ;;  %s379_s0 = inlined_call_operand.hbm [shape: f32[2,16], index: 0, kind: input, shape index: {}]   ;;  %s380_s1 = inlined_call_operand.vmem [shape: f32[16,16], index: 1, kind: input, shape index: {}]   ;;  %s381_s2 = inlined_call_operand.vmem [shape: f32[16,1], index: 2, kind: input, shape index: {}]   ;;  %s382_s3 = inlined_call_operand.vmem [shape: f32[4,16], index: 3, kind: input, shape index: {}]   ;;  %s383_s4 = inlined_call_operand.vmem [shape: f32[4,1], index: 4, kind: input, shape index: {}]   ;;  %s384_s5 = inlined_call_operand.vmem [shape: f32[4,2], index: 5, kind: output, shape index: {}]  }
   0x1   :  { %14 = vsyncadd [#allocation3], 2016  ;;  %s15_s20 = sshll.u32 %s379_s0, 4  ;;  %s286_s21 = smov [#allocation2]   ;;  %s16_s20 = int_to_ptr.hbm [resolvable:$true] %s15_s20 }
   0x2   :  { %s17_s22 = sshll.u32 %s286_s21, 4  ;;  %s287_s23 = smov 32   ;;  %s18_s22 = int_to_ptr.vmem [resolvable:$true] %s17_s22 }
   0x3   :  { %s288_s24 = smov 2  }
   0x4   :  { %23 = dma.hbm_to_vmem [thread:$0]  %s16_s20, 32, %s18_s22, [#allocation3], %s287_s23, %s287_s23, %s288_s24  }
   0x5   :  { %284 = dma.done.wait [#allocation3], 2048  }
   0x6   :  { %285 = vsyncadd [#allocation3], 4294965248  ;;  %vm68_vm0 = vcmask 130048   ;;  %v51_v0 = vld [vmem:[#allocation2 + $0x78] sm:$0xff]  ;;  %v50_v1 = vld [vmem:[#allocation2 + $0x70] sm:$0xff]  ;;  %v289_v11 = vmov 0  }
   0x7   :  { %215 = vmatpush.xpose.msk.msra.mxu0 %vm68_vm0, %v51_v0  ;;  %234 = vmatpush.xpose.msk.msra.mxu2 %vm68_vm0, %v51_v0  ;;  %v49_v2 = vld [vmem:[#allocation2 + $0x68] sm:$0xff]  ;;  %v48_v3 = vld [vmem:[#allocation2 + $0x60] sm:$0xff]  ;;  %v47_v4 = vld [vmem:[#allocation2 + $0x58] sm:$0xff]  ;;  %vm176_vm1 = vcmask 1043456  }
   0x8   :  { %v46_v5 = vld [vmem:[#allocation2 + $0x50] sm:$0xff]  ;;  %v45_v6 = vld [vmem:[#allocation2 + $0x48] sm:$0xff]  ;;  %v44_v7 = vld [vmem:[#allocation2 + $0x40] sm:$0xff]  ;;  %254 = vset.pattern.permute.xlu0 %v289_v11  ;;  %255 = vset.pattern.permute.xlu1 %v289_v11 }
   0x9   :  { %v43_v8 = vld [vmem:[#allocation2 + $0x38] sm:$0xff]  ;;  %v55_v9 = vld [vmem:[%s381_s2 + $0x8] sm:$0xff]  ;;  %v42_v10 = vld [vmem:[#allocation2 + $0x30] sm:$0xff] }
   0xa   :  { %65 = vperm.xlu0 %254, %v55_v9   ;;  %v41_v12 = vld [vmem:[#allocation2 + $0x28] sm:$0xff]  ;;  %v54_v13 = vld [vmem:[%s381_s2] sm:$0xff]  ;;  %v39_v15 = vld [vmem:[#allocation2 + $0x18] sm:$0xff] }
   0xb   :  { %216 = vmatpush.xpose.msk.msra.mxu0 %vm68_vm0, %v50_v1  ;;  %235 = vmatpush.xpose.msk.msra.mxu2 %vm68_vm0, %v50_v1  ;;  %v40_v14 = vld [vmem:[#allocation2 + $0x20] sm:$0xff]  ;;  %v38_v16 = vld [vmem:[#allocation2 + $0x10] sm:$0xff]  ;;  %v37_v17 = vld [vmem:[#allocation2 + $0x8] sm:$0xff] }
   0xc   :  { %v36_v18 = vld [vmem:[#allocation2] sm:$0xff]  ;;  %v53_v20 = vld [vmem:[%s380_s1 + $0x8] sm:$0xff] }
   0xd   :  { %v52_v19 = vld [vmem:[%s380_s1] sm:$0xff] }
   0xe   :  { %v57_v21 = vld [vmem:[%s383_s4] sm:$0xf] }
   0xf   :  { %217 = vmatpush.xpose.msk.msra.mxu0 %vm68_vm0, %v49_v2  ;;  %236 = vmatpush.xpose.msk.msra.mxu2 %vm68_vm0, %v49_v2  ;;  %v56_v30 = vld [vmem:[%s382_s3] sm:$0xf] }
  0x10   :  { %150 = vperm.xlu1 %255, %v57_v21  }
  0x12   :  { %60 = vperm.xlu0 %254, %v54_v13  }
  0x13   :  { %218 = vmatpush.xpose.msk.msra.mxu0 %vm68_vm0, %v48_v3  ;;  %237 = vmatpush.xpose.msk.msra.mxu2 %vm68_vm0, %v48_v3 }
  0x17   :  { %219 = vmatpush.xpose.msk.msra.mxu0 %vm68_vm0, %v47_v4  ;;  %238 = vmatpush.xpose.msk.msra.mxu2 %vm68_vm0, %v47_v4 }
  0x1b   :  { %220 = vmatpush.xpose.msk.msra.mxu0 %vm68_vm0, %v46_v5  ;;  %239 = vmatpush.xpose.msk.msra.mxu2 %vm68_vm0, %v46_v5 }
  0x1f   :  { %221 = vmatpush.xpose.msk.msra.mxu0 %vm68_vm0, %v45_v6  ;;  %240 = vmatpush.xpose.msk.msra.mxu2 %vm68_vm0, %v45_v6 }
  0x23   :  { %222 = vmatpush.xpose.msk.msra.mxu0 %vm68_vm0, %v44_v7  ;;  %241 = vmatpush.xpose.msk.msra.mxu2 %vm68_vm0, %v44_v7 }
  0x27   :  { %223 = vmatpush.xpose.msk.msra.mxu0 %vm68_vm0, %v43_v8  ;;  %242 = vmatpush.xpose.msk.msra.mxu2 %vm68_vm0, %v43_v8 }
  0x2b   :  { %224 = vmatpush.xpose.msk.msra.mxu0 %vm68_vm0, %v42_v10  ;;  %243 = vmatpush.xpose.msk.msra.mxu2 %vm68_vm0, %v42_v10 }
  0x2f   :  { %225 = vmatpush.xpose.msk.msra.mxu0 %vm68_vm0, %v41_v12  ;;  %244 = vmatpush.xpose.msk.msra.mxu2 %vm68_vm0, %v41_v12 }
  0x33   :  { %226 = vmatpush.xpose.msk.msra.mxu0 %vm68_vm0, %v40_v14  ;;  %245 = vmatpush.xpose.msk.msra.mxu2 %vm68_vm0, %v40_v14 }
  0x37   :  { %227 = vmatpush.xpose.msk.msra.mxu0 %vm68_vm0, %v39_v15  ;;  %246 = vmatpush.xpose.msk.msra.mxu2 %vm68_vm0, %v39_v15 }
  0x3b   :  { %228 = vmatpush.xpose.msk.msra.mxu0 %vm68_vm0, %v38_v16  ;;  %247 = vmatpush.xpose.msk.msra.mxu2 %vm68_vm0, %v38_v16 }
  0x3f   :  { %229 = vmatpush.xpose.msk.msra.mxu0 %vm68_vm0, %v37_v17  ;;  %248 = vmatpush.xpose.msk.msra.mxu2 %vm68_vm0, %v37_v17 }
  0x43   :  { %230 = vmatpush.xpose.msk.msra.mxu0 %vm68_vm0, %v36_v18  ;;  %249 = vmatpush.xpose.msk.msra.mxu2 %vm68_vm0, %v36_v18 }
  0x46   :  { %231 = vmatmul.msk.f32.vlgmr.msra.gmra.mxu0 %vm68_vm0, %v52_v19  ;;  %232 = vmatmul.msk.f32.vlgmr.msra.gmra.mxu2 %vm68_vm0, %v53_v20 }
  0x7c   :  { %v66_v22 = vpop.permute.xlu0 %65 }
  0x82   :  { %v151_v31 = vpop.permute.xlu1 %150 }
  0x84   :  { %v61_v23 = vpop.permute.xlu0 %60 }
  0xc3   :  { %v140_v24 = vpop.f32.mrf.mxu0 }
  0xc4   :  { %v141_v26 = vadd.f32 %v140_v24, %v61_v23 }
  0xc6   :  { %v146_v29 = vmax.f32 %v141_v26, 0.0 }
  0xc9   :  { %v143_v25 = vpop.f32.mrf.mxu2 }
  0xca   :  { %v144_v27 = vadd.f32 %v143_v25, %v66_v22 }
  0xcc   :  { %v147_v28 = vmax.f32 %v144_v27, 0.0 }
  0xce   :  { %170 = vmatpush.msra.mxu1 %v147_v28 }
  0xd0   :  { %171 = vmatpush.msra.mxu1 %v146_v29 }
  0xd1   :  { %233 = vmatmul.msk.f32.vlgmr.msra.gmra.mxu1 %vm68_vm0, %v56_v30 }
 0x14e   :  { %v173_v32 = vpop.f32.mrf.mxu1 }
 0x14f   :  { %v174_v33 = vadd.f32 %v173_v32, %v151_v31 }
 0x151   :  { %v177_v34 = vsel %vm176_vm1, %v174_v33, -inf }
 0x152   :  { %v178_v35 = vrot.slane %v177_v34, 4 }
 0x154   :  { %v179_v36 = vmax.f32 %v177_v34, %v178_v35 }
 0x156   :  { %v180_v37 = vrot.slane %v179_v36, 2 }
 0x158   :  { %v181_v38 = vmax.f32 %v179_v36, %v180_v37 }
 0x15a   :  { %v182_v39 = vrot.slane %v181_v38, 1 }
 0x15c   :  { %v183_v40 = vmax.f32 %v181_v38, %v182_v39 }
 0x15e   :  { %v184_v41 = vsub.f32 %v174_v33, %v183_v40 }
 0x160   :  { %v185_v42 = vmul.f32 1.442695, %v184_v41 }
 0x162   :  { %256 = vpow2.f32 %v185_v42 }
 0x168   :  { %v257_v43 = vpop.eup %256 }
 0x169   :  { %v187_v44 = vsel %vm176_vm1, %v257_v43, 0.0 }
 0x16a   :  { %v188_v45 = vrot.slane %v187_v44, 4 }
 0x16c   :  { %v189_v46 = vadd.f32 %v188_v45, %v187_v44 }
 0x16e   :  { %v190_v47 = vrot.slane %v189_v46, 2 }
 0x170   :  { %v191_v48 = vadd.f32 %v190_v47, %v189_v46 }
 0x172   :  { %v192_v49 = vrot.slane %v191_v48, 1 }
 0x174   :  { %v193_v50 = vadd.f32 %v192_v49, %v191_v48 }
 0x176   :  { %258 = vrcp.f32 %v193_v50  ;;  %v205_v54 = vand.u32 2147483648, %v193_v50  ;;  %v203_v56 = vand.u32 2147483647, %v193_v50  ;;  %vm199_vm3 = vweird.f32 %v193_v50 }
 0x178   :  { %v206_v58 = vor.u32 1.1754944e-38, %v205_v54  ;;  %vm204_vm5 = vcmp.eq.f32.partialorder %v203_v56, 8.507059e+37 }
 0x17c   :  { %v259_v51 = vpop.eup %258 }
 0x17d   :  { %v195_v52 = vmul.f32 %v259_v51, %v193_v50  ;;  %vm200_vm2 = vweird.f32 %v259_v51 }
 0x17e   :  { %vm201_vm4 = vmor %vm199_vm3, %vm200_vm2 }
 0x17f   :  { %v196_v53 = vsub.f32 1.0, %v195_v52 }
 0x181   :  { %v197_v55 = vmul.f32 %v259_v51, %v196_v53 }
 0x183   :  { %v198_v57 = vadd.f32 %v259_v51, %v197_v55 }
 0x185   :  { %v202_v59 = vsel %vm201_vm4, %v259_v51, %v198_v57 }
 0x186   :  { %v207_v60 = vsel %vm204_vm5, %v206_v58, %v202_v59 }
 0x187   :  { %v208_v61 = vmul.f32 %v257_v43, %v207_v60 }
 0x189   :  { %209 = vst [vmem:[%s384_s5] sm:$0xf] %v208_v61 }
 0x18a   :  { %214 = vsyncpa [#allocation3], 1 }

</bundles_post_ra>
